<compile_context>
chip_gen: v7x
topology: tpu7x:2x2x1
jax: 0.10.0
libtpu: 0.0.40
codegen_flags: <defaults>
</compile_context>

<pallas_src>
import jax
import jax.numpy as jnp
from jax import lax
from jax.experimental import pallas as pl
from jax.experimental.pallas import tpu as pltpu

POLARITY_COLUMN = 3
X_COLUMN = 1
Y_COLUMN = 2


def _round_up(x, m):
    return ((x + m - 1) // m) * m


def _cdiv(a, b):
    return (a + b - 1) // b


# ---------------------------------------------------------------------------
# Pallas kernel: conv-as-matmul over the active event sites only.
#   out(Cout, TM) = W(Cout, Kc) . P(TM, Kc)^T  + bias(Cout, 1)
# ---------------------------------------------------------------------------
def _conv_matmul_kernel(w_ref, p_ref, b_ref, o_ref):
    # w_ref: (Cout, Kc) bf16 (resident)   p_ref: (TM, Kc) bf16 (streamed tile)
    # b_ref: (Cout, 1)  f32 (resident)    o_ref: (Cout, TM) bf16 (lane-dense on M)
    acc = lax.dot_general(
        w_ref[...], p_ref[...],
        dimension_numbers=(((1,), (1,)), ((), ())),   # contract Kc = last dim of both
        preferred_element_type=jnp.float32,
    )
    o_ref[...] = (acc + b_ref[...]).astype(o_ref.dtype)


def conv_matmul_pallas(w, patches, bias_col, tm):
    Cout, kc = w.shape
    m_pad, _ = patches.shape
    grid = (m_pad // tm,)
    return pl.pallas_call(
        _conv_matmul_kernel,
        out_shape=jax.ShapeDtypeStruct((Cout, m_pad), jnp.bfloat16),
        grid=grid,
        in_specs=[
            # Kc kept at full extent (162): full-array block dims are exempt from the (8,128) rule,
            # so no zero-pad HBM traffic on the contraction axis.
            pl.BlockSpec((Cout, kc), lambda i: (0, 0)),   # weight: resident
            pl.BlockSpec((tm, kc), lambda i: (i, 0)),     # patch tile: streamed over M
            pl.BlockSpec((Cout, 1), lambda i: (0, 0)),    # bias: resident
        ],
        out_specs=pl.BlockSpec((Cout, tm), lambda i: (0, i)),
        compiler_params=pltpu.CompilerParams(
            dimension_semantics=("parallel",),            # lets v7x shard tiles across both TCs
            vmem_limit_bytes=32 * 1024 * 1024,
        ),
    )(w, patches, bias_col)


# ---------------------------------------------------------------------------
# Glue: event -> dense image (scatter-add), per-event KxK patch gather
# ---------------------------------------------------------------------------
def _event_sites(xytp, height, width):
    B, N, _ = xytp.shape
    p = xytp[..., POLARITY_COLUMN]
    feat = jnp.stack([p, 1.0 - p], axis=-1).reshape(B * N, 2)  # [pos, neg]

    y_idx = jnp.round(xytp[..., Y_COLUMN] * height).astype(jnp.int32).reshape(-1)
    x_idx = jnp.round(xytp[..., X_COLUMN] * width).astype(jnp.int32).reshape(-1)
    b_idx = jnp.repeat(jnp.arange(B, dtype=jnp.int32), N)

    valid = (y_idx >= 0) & (y_idx < height) & (x_idx >= 0) & (x_idx < width)
    yc = jnp.clip(y_idx, 0, height - 1)
    xc = jnp.clip(x_idx, 0, width - 1)
    return feat, b_idx, yc, xc, valid


def _build_dense(feat, b_idx, yc, xc, valid, B, height, width):
    # scn.InputLayer mode=3: sum features of duplicate coordinates; drop out-of-range events.
    # Scatter-add stays f32 so per-site duplicate counts are exact.
    dense = jnp.zeros((B, height, width, feat.shape[-1]), jnp.float32)
    dense = dense.at[b_idx, yc, xc].add(feat * valid[:, None].astype(jnp.float32))
    return dense


def _gather_event_patches(dense, b_idx, yc, xc, K):
    # Submanifold sparsity: KxK neighborhoods gathered only at the active event sites.
    B, H, W, Cin = dense.shape
    pad = (K - 1) // 2
    dpad = jnp.pad(dense, ((0, 0), (pad, pad), (pad, pad), (0, 0)))
    ky = jnp.arange(K, dtype=jnp.int32)
    kx = jnp.arange(K, dtype=jnp.int32)
    rows = yc[:, None, None] + ky[None, :, None]          # (M, K, 1)
    cols = xc[:, None, None] + kx[None, None, :]          # (M, 1, K)
    patches = dpad[b_idx[:, None, None], rows, cols, :]   # (M, K, K, Cin) -- (ky, kx, ci) order
    return patches.reshape(b_idx.shape[0], K * K * Cin)


def _choose_tile(M, tm_target):
    # Size TM to minimize pad waste; keep an even tile count whenever the work splits so v7x's
    # two TensorCores don't leave a straggler (irrelevant on single-TC v5e/v6e).
    n_tiles = max(1, _cdiv(M, tm_target))
    if n_tiles > 1 and n_tiles % 2 == 1:
        n_tiles += 1
    tm = _round_up(_cdiv(M, n_tiles), 128)
    m_pad = _round_up(M, tm)
    return tm, m_pad


def spatial_embedding_forward(xytp, weight, bias, height, width, tm_target=4096):
    """weight: (K, K, Cin, Cout) HWIO, bias: (Cout,). Returns (B, N, Cout) float32."""
    B, N, _ = xytp.shape
    K, _, Cin, Cout = weight.shape
    M = B * N
    Kc = K * K * Cin

    feat, b_idx, yc, xc, valid = _event_sites(xytp, height, width)
    dense = _build_dense(feat, b_idx, yc, xc, valid, B, height, width)   # (B,H,W,Cin) f32, tiny

    TM, M_pad = _choose_tile(M, tm_target)

    # Pad only the cheap int32 index vectors, then gather from the bf16 dense image so the
    # (M_pad, Kc) bf16 patches tensor is materialized once, directly in its kernel layout
    # (no separate transpose/cast/pad pass over the largest array).
    pad_m = M_pad - M
    b_pad = jnp.pad(b_idx, (0, pad_m))
    y_pad = jnp.pad(yc, (0, pad_m))
    x_pad = jnp.pad(xc, (0, pad_m))

    # NOTE: bf16 patch features keep duplicate-event counts exact only up to 256 per site; keep
    #       the patches f32 instead if event pile-up can exceed that.
    dense_bf16 = dense.astype(jnp.bfloat16)
    patches = _gather_event_patches(dense_bf16, b_pad, y_pad, x_pad, K)  # (M_pad, Kc) bf16

    w_bf = weight.reshape(Kc, Cout).astype(jnp.bfloat16).T               # (Cout, Kc) bf16
    bias_col = bias.astype(jnp.float32).reshape(Cout, 1)

    out_t = conv_matmul_pallas(w_bf, patches, bias_col, TM)              # (Cout, M_pad) bf16

    # scn.OutputLayer: each event's own site output; dropped (out-of-range) events -> 0.
    out = out_t[:, :M].T.astype(jnp.float32) * valid[:, None].astype(jnp.float32)
    return out.reshape(B, N, Cout)


# Pure-JAX reference for verification (dense SAME conv + gather, all f32)
def spatial_embedding_reference(xytp, weight, bias, height, width):
    B, N, _ = xytp.shape
    Cout = weight.shape[-1]
    feat, b_idx, yc, xc, valid = _event_sites(xytp, height, width)
    dense = _build_dense(feat, b_idx, yc, xc, valid, B, height, width)
    out_dense = jax.lax.conv_general_dilated(
        dense, weight, window_strides=(1, 1), padding="SAME",
        dimension_numbers=("NHWC", "HWIO", "NHWC")) + bias
    gathered = out_dense[b_idx, yc, xc] * valid[:, None].astype(jnp.float32)
    return gathered.reshape(B, N, Cout)


if __name__ == "__main__":
    # Small shapes consistent with the module: SpatialEmbedding(height=16, width=16,
    # in_channel=0, out_channel=32, filter_size=9); events xytp: (B=2, N=8, 4)
    B, N = 2, 8
    H = W = 16
    in_channel = 0          # forward passes features=None -> only the 2 polarity channels
    Cin = in_channel + 2
    Cout = 32
    K = 9

    key = jax.random.PRNGKey(0)
    k1, k2, k3, k4 = jax.random.split(key, 4)

    t = jax.random.uniform(k1, (B, N, 1), dtype=jnp.float32)
    xy = jax.random.uniform(k2, (B, N, 2), dtype=jnp.float32, minval=0.0, maxval=0.95)
    pol = jax.random.bernoulli(k3, 0.5, (B, N, 1)).astype(jnp.float32)
    xytp = jnp.concatenate([t, xy, pol], axis=-1)     # columns: [t, x, y, p]

    fan_in = Cin * K * K
    weight = jax.random.normal(k4, (K, K, Cin, Cout), jnp.float32) / (fan_in ** 0.5)
    bias = jnp.linspace(-0.1, 0.1, Cout, dtype=jnp.float32)

    out = spatial_embedding_forward(xytp, weight, bias, H, W)
    out = jax.block_until_ready(out)
    assert out.shape == (B, N, Cout), out.shape

    ref = jax.block_until_ready(spatial_embedding_reference(xytp, weight, bias, H, W))
    # bf16 matmul operands / bf16 kernel output -> loosened tolerance vs. the f32 reference
    assert jnp.allclose(out, ref, atol=2e-2, rtol=2e-2), float(jnp.max(jnp.abs(out - ref)))

    print("KERNEL_OK")
</pallas_src>

<mosaic_0001>
module attributes {stable_mosaic.version = 11 : i64} {
  func.func @_conv_matmul_kernel(%arg0: i32, %arg1: memref<32x162xbf16, #tpu.memory_space<vmem>>, %arg2: memref<128x162xbf16, #tpu.memory_space<vmem>>, %arg3: memref<32x1xf32, #tpu.memory_space<vmem>>, %arg4: memref<32x128xbf16, #tpu.memory_space<vmem>>) attributes {dimension_semantics = [#tpu.dimension_semantics<parallel>], iteration_bounds = array<i64: 1>, scalar_prefetch = 0 : i64, scratch_operands = 0 : i64, tpu.core_type = #tpu.core_type<tc>, window_params = [{pipeline_mode = #tpu.pipeline_mode<synchronous>, transform_indices = @transform_0, window_bounds = array<i64: 32, 162>}, {transform_indices = @transform_1, window_bounds = array<i64: 128, 162>}, {pipeline_mode = #tpu.pipeline_mode<synchronous>, transform_indices = @transform_2, window_bounds = array<i64: 32, 1>}, {transform_indices = @transform_3, window_bounds = array<i64: 32, 128>}]} {
    %c0 = arith.constant 0 : index
    %c0_0 = arith.constant 0 : index
    %0 = vector.load %arg1[%c0, %c0_0] : memref<32x162xbf16, #tpu.memory_space<vmem>>, vector<32x162xbf16>
    %c0_1 = arith.constant 0 : index
    %c0_2 = arith.constant 0 : index
    %1 = vector.load %arg2[%c0_1, %c0_2] : memref<128x162xbf16, #tpu.memory_space<vmem>>, vector<128x162xbf16>
    %cst = arith.constant dense<0.000000e+00> : vector<32x128xf32>
    %2 = tpu.matmul %0, %1, %cst {dimension_numbers = #tpu.dot_dimension_numbers<[1], [1], [0], [0], [0, 0, 1, 0], [], []>} : vector<32x162xbf16>, vector<128x162xbf16>, vector<32x128xf32> -> vector<32x128xf32>
    %c0_3 = arith.constant 0 : index
    %c0_4 = arith.constant 0 : index
    %3 = vector.load %arg3[%c0_3, %c0_4] : memref<32x1xf32, #tpu.memory_space<vmem>>, vector<32x1xf32>
    %4 = vector.broadcast %3 : vector<32x1xf32> to vector<32x128xf32>
    %5 = arith.addf %2, %4 : vector<32x128xf32>
    %6 = arith.truncf %5 : vector<32x128xf32> to vector<32x128xbf16>
    %c0_5 = arith.constant 0 : index
    %c0_6 = arith.constant 0 : index
    %7 = vector.load %arg4[%c0_5, %c0_6] : memref<32x128xbf16, #tpu.memory_space<vmem>>, vector<32x128xbf16>
    tpu.vector_store %arg4[%c0_5, %c0_6], %6 {strides = array<i32>} : memref<32x128xbf16, #tpu.memory_space<vmem>>, vector<32x128xbf16>,
    return
  }
  func.func @transform_0(%arg0: i32) -> (i32, i32) {
    %c0_i32 = arith.constant 0 : i32
    %c0_i32_0 = arith.constant 0 : i32
    %c0_i32_1 = arith.constant 0 : i32
    return %c0_i32, %c0_i32_0 : i32, i32
  }
  func.func @transform_1(%arg0: i32) -> (i32, i32) {
    %c0_i32 = arith.constant 0 : i32
    %c0_i32_0 = arith.constant 0 : i32
    return %arg0, %c0_i32 : i32, i32
  }
  func.func @transform_2(%arg0: i32) -> (i32, i32) {
    %c0_i32 = arith.constant 0 : i32
    %c0_i32_0 = arith.constant 0 : i32
    %c0_i32_1 = arith.constant 0 : i32
    return %c0_i32, %c0_i32_0 : i32, i32
  }
  func.func @transform_3(%arg0: i32) -> (i32, i32) {
    %c0_i32 = arith.constant 0 : i32
    %c0_i32_0 = arith.constant 0 : i32
    return %c0_i32, %arg0 : i32, i32
  }
}

</mosaic_0001>

<bundles_post_ra>
// kernel: tpu_custom_call.1
= control target key start
LH: loop header
LB: loop body
LE: loop exit
PB: predicated region body
PF: predicated region fallthrough
CT: control target
= control target key end

     0   :  { %vm150_vm0 = vcmask 277504   ;;  %v391_v2 = vmov 0   ;;  %s517_s0 = inlined_call_operand.vmem [shape: bf16[32,162], index: 0, kind: input, shape index: {}]   ;;  %s518_s1 = inlined_call_operand.vmem [shape: bf16[128,162], index: 1, kind: input, shape index: {}]   ;;  %s519_s2 = inlined_call_operand.vmem [shape: f32[32,1], index: 2, kind: input, shape index: {}]   ;;  %s520_s3 = inlined_call_operand.hbm [shape: bf16[32,128], index: 3, kind: output, shape index: {}]  }
   0x1   :  { %v337_v0 = vld [vmem:[%s518_s1 + $0x4] ss:$8 sps:$4 sm:$0xff]   ;;  %v339_v1 = vld [vmem:[%s518_s1] ss:$8 sps:$4 sm:$0xff]   ;;  %336 = vset.pattern.permute.xlu1 %v391_v2  ;;  %335 = vset.pattern.permute.xlu0 %v391_v2  ;;  %v340_v3 = vld [vmem:[%s518_s1 + $0x14] ss:$8 sps:$4 sm:$0xff]  }
   0x2   :  { %286 = vmatprep.subr.msk.bf16.mxu0 %vm150_vm0, %v337_v0  ;;  %315 = vmatprep.subr.msk.bf16.mxu1 %vm150_vm0, %v337_v0  ;;  %v342_v4 = vld [vmem:[%s518_s1 + $0x10] ss:$8 sps:$4 sm:$0xff]   ;;  %v343_v5 = vld [vmem:[%s518_s1 + $0x24] ss:$8 sps:$4 sm:$0xff]   ;;  %v366_v7 = vld [vmem:[%s517_s0 + $0x14] ss:$8 sps:$4 sm:$0xff]  }
   0x3   :  { %182 = vmatpush1.bf16.xpose.msra.mxu0 %v339_v1  ;;  %323 = vmatpush1.bf16.xpose.msra.mxu1 %v339_v1  ;;  %v363_v6 = vld [vmem:[%s517_s0 + $0x4] ss:$8 sps:$4 sm:$0xff]   ;;  %v38_v8 = vld [vmem:[%s519_s2 + $0x10] sm:$0xff] }
   0x4   :  { %287 = vmatprep.subr.msk.bf16.mxu0 %vm150_vm0, %v340_v3  ;;  %316 = vmatprep.subr.msk.bf16.mxu1 %vm150_vm0, %v340_v3  ;;  %v36_v9 = vld [vmem:[%s519_s2] sm:$0xff] }
   0x5   :  { %294 = vmatprep.mubr.msk.bf16.mxu0 %vm150_vm0, %v363_v6  ;;  %52 = vperm.xlu1 %336, %v38_v8  }
   0x6   :  { %42 = vperm.xlu0 %335, %v36_v9  }
   0xb   :  { %184 = vmatpush1.bf16.xpose.msra.mxu0 %v342_v4  ;;  %324 = vmatpush1.bf16.xpose.msra.mxu1 %v342_v4 }
   0xc   :  { %288 = vmatprep.subr.msk.bf16.mxu0 %vm150_vm0, %v343_v5  ;;  %317 = vmatprep.subr.msk.bf16.mxu1 %vm150_vm0, %v343_v5 }
   0xd   :  { %8 = vsyncpa [#allocation3], 0  ;;  %v345_v10 = vld [vmem:[%s518_s1 + $0x20] ss:$8 sps:$4 sm:$0xff]   ;;  %295 = vmatprep.mubr.msk.bf16.mxu1 %vm150_vm0, %v366_v7  ;;  %v39_v11 = vld [vmem:[%s519_s2 + $0x18] sm:$0xff] }
   0xe   :  { %v37_v12 = vld [vmem:[%s519_s2 + $0x8] sm:$0xff]  ;;  %v346_v13 = vld [vmem:[%s518_s1 + $0x34] ss:$8 sps:$4 sm:$0xff]   ;;  %57 = vperm.xlu1 %336, %v39_v11   ;;  %v348_v14 = vld [vmem:[%s518_s1 + $0x30] ss:$8 sps:$4 sm:$0xff]  }
   0xf   :  { %47 = vperm.xlu0 %335, %v37_v12   ;;  %v349_v15 = vld [vmem:[%s518_s1 + $0x44] ss:$8 sps:$4 sm:$0xff]   ;;  %v351_v16 = vld [vmem:[%s518_s1 + $0x40] ss:$8 sps:$4 sm:$0xff]   ;;  %v352_v17 = vld [vmem:[%s518_s1 + $0x54] ss:$8 sps:$4 sm:$0xff]  }
  0x10   :  { %v354_v18 = vld [vmem:[%s518_s1 + $0x50] ss:$8 sps:$4 sm:$0xff]   ;;  %v355_v19 = vld [vmem:[%s518_s1 + $0x64] ss:$8 sps:$4 sm:$0xff]   ;;  %v357_v20 = vld [vmem:[%s518_s1 + $0x60] ss:$8 sps:$4 sm:$0xff]  }
  0x11   :  { %v358_v21 = vld [vmem:[%s518_s1 + $0x74] ss:$8 sps:$4 sm:$0xff]   ;;  %v360_v22 = vld [vmem:[%s518_s1 + $0x70] ss:$8 sps:$4 sm:$0xff]   ;;  %v361_v23 = vld [vmem:[%s517_s0] ss:$8 sps:$4 sm:$0xff]  }
  0x12   :  { %v364_v24 = vld [vmem:[%s517_s0 + $0x10] ss:$8 sps:$4 sm:$0xff]   ;;  %s392_s1 = smov [#allocation2]  }
  0x13   :  { %186 = vmatpush1.bf16.xpose.msra.mxu0 %v345_v10  ;;  %325 = vmatpush1.bf16.xpose.msra.mxu1 %v345_v10  ;;  %s255_s5 = sshll.u32 %s392_s1, 4  ;;  %s256_s5 = int_to_ptr.vmem [resolvable:$true] %s255_s5 }
  0x14   :  { %289 = vmatprep.subr.msk.bf16.mxu0 %vm150_vm0, %v346_v13  ;;  %318 = vmatprep.subr.msk.bf16.mxu1 %vm150_vm0, %v346_v13  ;;  %s367_s0 = scalar_lea.vmem %s256_s5, 256  ;;  %p372_p1 = scmp.lt.s32.totalorder %s256_s5, %s256_s5 }
  0x15   :  { %p368_p0 = scmp.ne.s32.totalorder %s256_s5, %s367_s0  ;;  %p373_p2 = scmp.lt.s32.totalorder %s367_s0, %s367_s0 }
  0x17   :  { %p374_p3 = por %p373_p2, %p372_p1 }
  0x19   :  { %p375_p4 = pnand %p374_p3, %p368_p0 }
  0x1b   :  { %188 = vmatpush1.bf16.xpose.msra.mxu0 %v348_v14  ;;  %326 = vmatpush1.bf16.xpose.msra.mxu1 %v348_v14 }
  0x1c   :  { %290 = vmatprep.subr.msk.bf16.mxu0 %vm150_vm0, %v349_v15  ;;  %319 = vmatprep.subr.msk.bf16.mxu1 %vm150_vm0, %v349_v15 }
  0x23   :  { %190 = vmatpush1.bf16.xpose.msra.mxu0 %v351_v16  ;;  %327 = vmatpush1.bf16.xpose.msra.mxu1 %v351_v16 }
  0x24   :  { %291 = vmatprep.subr.msk.bf16.mxu0 %vm150_vm0, %v352_v17  ;;  %320 = vmatprep.subr.msk.bf16.mxu1 %vm150_vm0, %v352_v17 }
  0x2b   :  { %192 = vmatpush1.bf16.xpose.msra.mxu0 %v354_v18  ;;  %328 = vmatpush1.bf16.xpose.msra.mxu1 %v354_v18 }
  0x2c   :  { %292 = vmatprep.subr.msk.bf16.mxu0 %vm150_vm0, %v355_v19  ;;  %321 = vmatprep.subr.msk.bf16.mxu1 %vm150_vm0, %v355_v19 }
  0x33   :  { %194 = vmatpush1.bf16.xpose.msra.mxu0 %v357_v20  ;;  %329 = vmatpush1.bf16.xpose.msra.mxu1 %v357_v20 }
  0x34   :  { %293 = vmatprep.subr.msk.bf16.mxu0 %vm150_vm0, %v358_v21  ;;  %322 = vmatprep.subr.msk.bf16.mxu1 %vm150_vm0, %v358_v21 }
  0x3b   :  { %196 = vmatpush1.bf16.xpose.msra.mxu0 %v360_v22  ;;  %330 = vmatpush1.bf16.xpose.msra.mxu1 %v360_v22 }
  0x42   :  { %214 = vmatmul.mubr.bf16.vlgmr.msra.gmra.mrb[0].mxu0 %v361_v23  ;;  %222 = vmatmul.mubr.bf16.vlgmr.msra.gmra.mrb[0].mxu1 %v364_v24 }
  0x84   :  { %v53_v25 = vpop.permute.xlu1 %52 }
  0x85   :  { %v43_v26 = vpop.permute.xlu0 %42 }
  0x8d   :  { %v58_v27 = vpop.permute.xlu1 %57 }
  0x8e   :  { %v48_v28 = vpop.permute.xlu0 %47 }
 0x115   :  { %v215_v29 = vpop.f32.mrb[0].mxu0  ;;  %v223_v30 = vpop.f32.mrb[0].mxu1 }
 0x116   :  { %v217_v31 = vpop.f32.mrb[1].mxu0  ;;  %v225_v32 = vpop.f32.mrb[1].mxu1  ;;  %v216_v35 = vadd.f32 %v215_v29, %v43_v26  ;;  %v224_v36 = vadd.f32 %v223_v30, %v53_v25 }
 0x117   :  { %v218_v33 = vpop.f32.mrb[2].mxu0  ;;  %v226_v34 = vpop.f32.mrb[2].mxu1 }
 0x118   :  { %v219_v37 = vadd.f32 %v218_v33, %v48_v28  ;;  %v227_v38 = vadd.f32 %v226_v34, %v58_v27  ;;  %v220_v39 = vpop.f32.mrb[3].mxu0  ;;  %v228_v40 = vpop.f32.mrb[3].mxu1 }
 0x11a   :  { %v307_v41 = vpack.c.bf16 %v219_v37, %v216_v35  ;;  %v312_v42 = vpack.c.bf16 %v227_v38, %v224_v36 }
 0x11c   :  { %308 = vst [vmem:[#allocation2] sm:$0xff] %v307_v41   ;;  %314 = vst [vmem:[#allocation2 + $0x8] sm:$0xff] %v312_v42  }
 0x11d   :  { %378 = shalt.err (!%p375_p4)
}
 0x11e   :  { %s379_s8 = scalar_lea.hbm %s520_s3, 256 }
 0x11f   :  { %p380_p5 = scmp.ne.s32.totalorder %s520_s3, %s379_s8  ;;  %p383_p6 = scmp.lt.u32.totalorder %s379_s8, %s520_s3 }
 0x121   :  { %p385_p7 = pnand %p383_p6, %p380_p5 }
 0x123   :  { %388 = shalt.err (!%p385_p7)
}
 0x124   :  { %s393_s13 = smov 64   ;;  %s394_s14 = smov 4  }
 0x125   :  { %261 = dma.vmem_to_hbm [thread:$0]  %s256_s5, 256, %s520_s3, [#allocation3], %s393_s13, %s393_s13, %s394_s14  }
 0x126   :  { %389 = dma.done.wait [#allocation3], 256  }
 0x127   :  { %390 = vsyncadd [#allocation3], 4294967040 }
 0x128   :  { %265 = vsyncpa [#allocation3], 1 }

</bundles_post_ra>
